<compile_context>
chip_gen: v7x
topology: tpu7x:2x2x1
jax: 0.10.0
libtpu: 0.0.40
codegen_flags: <defaults>
</compile_context>

<pallas_src>
import jax
import jax.numpy as jnp
from jax.experimental import pallas as pl
from jax.experimental.pallas import tpu as pltpu


def _reduce_kernel(h_ref, sum_ref, tok_ref, max_val):
    """Streaming reduce. Grid = (B_tiles, S_tiles); S is the reduction axis.

    Resident outputs (constant output-block index over S):
      sum_ref [TB, H] f32 : running token sum
      tok_ref [TB, H] f32 : token with the max L2 norm seen so far
    Scratch:
      max_val [TB, 1] f32 : running max squared norm
    """
    s = pl.program_id(1)

    @pl.when(s == 0)
    def _init():
        sum_ref[...] = jnp.zeros_like(sum_ref)
        tok_ref[...] = jnp.zeros_like(tok_ref)
        max_val[...] = jnp.full_like(max_val, -jnp.inf)

    h = h_ref[...]                                            # [TB, TS, H], input dtype
    TB, TS, _ = h.shape

    # Token sum with f32 accumulation (cast fused into the reduction; no explicit
    # full-tile f32 temp is kept live).
    sum_ref[...] += jnp.sum(h, axis=1, dtype=jnp.float32)

    # Per-token squared L2 norms, accumulated in f32.
    sq = jnp.sum(h * h, axis=2, dtype=jnp.float32)            # [TB, TS]
    tile_max = jnp.max(sq, axis=1, keepdims=True)             # [TB, 1]

    # Only run the one-hot extraction when some row of this tile can beat the
    # running max (expected hits per row ~ ln(num_S_tiles)); most tiles skip
    # ~2 of the ~5 VALU ops/element.
    @pl.when(jnp.any(tile_max > max_val[...]))
    def _update():
        iota = jax.lax.broadcasted_iota(jnp.int32, (TB, TS), 1)
        # First-index argmax within the tile (matches torch.argmax ties).
        tile_idx = jnp.min(jnp.where(sq >= tile_max, iota, TS),
                           axis=1, keepdims=True)             # [TB, 1]
        onehot = (iota == tile_idx).astype(h.dtype)           # [TB, TS] exact 0/1
        tile_tok = jnp.sum(onehot[:, :, None] * h, axis=1,
                           dtype=jnp.float32)                 # [TB, H] exact row copy
        # Strict '>' keeps the earliest-tile winner on cross-tile ties.
        update = tile_max > max_val[...]                      # [TB, 1]
        max_val[...] = jnp.where(update, tile_max, max_val[...])
        tok_ref[...] = jnp.where(update, tile_tok, tok_ref[...])


def _linear_tanh_kernel(sum_ref, tok_ref, w_sum_ref, w_max_ref, b_ref, o_ref):
    """Single-block finalize: tanh(sum @ W_sum + max_tok @ W_max + b)."""
    out = jnp.dot(sum_ref[...], w_sum_ref[...], preferred_element_type=jnp.float32)
    out = out + jnp.dot(tok_ref[...], w_max_ref[...], preferred_element_type=jnp.float32)
    out = out + b_ref[...]                                    # broadcast [1, H]
    o_ref[...] = jnp.tanh(out).astype(o_ref.dtype)


def _round_up(x, m):
    return ((x + m - 1) // m) * m


def _pick_batch_tile(B):
    # 8-row tiles (f32 sublane granule). Prefer >= 2 B-tiles so the "parallel"
    # axis can be sharded across v7x's two TensorCores; small or non-multiple
    # batches fall back to one full-extent tile (always layout-legal).
    if B >= 16 and B % 8 == 0:
        return 8
    return B


def _vmem_capacity_bytes():
    try:
        return int(pltpu.get_tpu_info().vmem_capacity_bytes)
    except Exception:
        return 64 * 1024 * 1024   # conservative default (v7x per-TC VMEM)


def mean_max_tokens_pooler(hidden_states, weight, bias):
    """hidden_states: [B, S, H]; weight: [H, 2H] (PyTorch layout); bias: [H]."""
    B, S, H = hidden_states.shape
    assert weight.shape == (H, 2 * H) and bias.shape == (H,)
    out_dtype = hidden_states.dtype

    # Split the linear so cat([sum, max_tok]) @ W^T == sum @ W_sum + max_tok @ W_max.
    w_t = weight.T.astype(jnp.float32)        # [2H, H]
    w_sum = w_t[:H, :]                        # applied to the token-sum half
    w_max = w_t[H:, :]                        # applied to the max-norm-token half
    b2 = bias.reshape(1, H).astype(jnp.float32)

    # --- generation-aware VMEM budget ---------------------------------------
    vmem_cap = _vmem_capacity_bytes()
    vmem_limit = (vmem_cap * 3) // 4           # 48 MiB on v7x, 96 MiB on v5e/v6e
    hid_budget = max(1 << 20, vmem_cap // 8)   # per hidden buffer (x2 double-buffered)

    itemsize = jnp.dtype(hidden_states.dtype).itemsize
    granule = {4: 8, 2: 16}.get(itemsize, 32)  # sublane packing granule per dtype
    TB = _pick_batch_tile(B)

    ts_budget_rows = max(granule, hid_budget // max(1, TB * H * itemsize))
    TS = min(_round_up(S, granule), (ts_budget_rows // granule) * granule)
    TS = max(TS, granule)
    S_pad = _round_up(S, TS)
    if S_pad != S:
        # Zero rows add 0 to the token sum and can never win the strict-'>'
        # cross-tile max, so zero-padding S preserves the module's semantics.
        hidden_states = jnp.pad(hidden_states, ((0, 0), (0, S_pad - S), (0, 0)))

    grid = (B // TB, S_pad // TS)

    reduce_grid_spec = pltpu.PrefetchScalarGridSpec(
        num_scalar_prefetch=0,
        grid=grid,
        in_specs=[pl.BlockSpec((TB, TS, H), lambda b, s: (b, s, 0))],
        out_specs=(
            pl.BlockSpec((TB, H), lambda b, s: (b, 0)),   # tok_sum (resident acc)
            pl.BlockSpec((TB, H), lambda b, s: (b, 0)),   # max_tok (resident acc)
        ),
        scratch_shapes=[pltpu.VMEM((TB, 1), jnp.float32)],  # running max sq-norm
    )

    reduce_cost = pl.CostEstimate(
        flops=int(6 * B * S_pad * H),
        transcendentals=0,
        bytes_accessed=int(B * S_pad * H * itemsize + 2 * B * H * 4),
    )

    tok_sum, max_tok = pl.pallas_call(
        _reduce_kernel,
        out_shape=(jax.ShapeDtypeStruct((B, H), jnp.float32),
                   jax.ShapeDtypeStruct((B, H), jnp.float32)),
        grid_spec=reduce_grid_spec,
        compiler_params=pltpu.CompilerParams(
            dimension_semantics=("parallel", "arbitrary"),
            vmem_limit_bytes=int(vmem_limit),
        ),
        cost_estimate=reduce_cost,
    )(hidden_states)

    # Finalize: full-B matmuls on the MXU + bias + tanh, single VMEM block.
    # TODO(synk): tile this finalize over B / H for very large B*H or H >~ 2048.
    final_cost = pl.CostEstimate(
        flops=int(2 * B * (2 * H) * H + 2 * B * H),
        transcendentals=int(B * H),
        bytes_accessed=int((2 * B * H + 2 * H * H + H) * 4 + B * H * itemsize),
    )
    out = pl.pallas_call(
        _linear_tanh_kernel,
        out_shape=jax.ShapeDtypeStruct((B, H), out_dtype),
        compiler_params=pltpu.CompilerParams(vmem_limit_bytes=int(vmem_limit)),
        cost_estimate=final_cost,
    )(tok_sum, max_tok, w_sum, w_max, b2)
    return out


def _reference(hidden_states, weight, bias):
    tok_sum = jnp.sum(hidden_states, axis=1)                          # [B, H]
    norms = jnp.linalg.norm(hidden_states, axis=2)                    # [B, S]
    idx = jnp.argmax(norms, axis=1)                                   # [B]
    max_tok = hidden_states[jnp.arange(hidden_states.shape[0]), idx]  # [B, H]
    cat = jnp.concatenate([tok_sum, max_tok], axis=1)                 # [B, 2H]
    return jnp.tanh(cat @ weight.T + bias)


if __name__ == "__main__":
    B, S, H = 2, 8, 32  # batch, seq, hidden (toy shapes)

    key = jax.random.PRNGKey(0)
    k_h, k_w, k_b = jax.random.split(key, 3)

    hidden_states = jax.random.normal(k_h, (B, S, H), dtype=jnp.float32)
    # Deterministic Linear(2H -> H) params (PyTorch-style uniform bound).
    bound = 1.0 / jnp.sqrt(2.0 * H)
    weight = jax.random.uniform(k_w, (H, 2 * H), jnp.float32, -bound, bound)
    bias = jax.random.uniform(k_b, (H,), jnp.float32, -bound, bound)

    out = mean_max_tokens_pooler(hidden_states, weight, bias)
    out = jax.block_until_ready(out)

    ref = _reference(hidden_states, weight, bias)
    assert out.shape == (B, H)
    assert jnp.allclose(out, ref, atol=1e-5, rtol=1e-5), "mismatch vs JAX reference"

    print("KERNEL_OK")
</pallas_src>

<mosaic_0001>
module attributes {stable_mosaic.version = 11 : i64} {
  func.func @_reduce_kernel(%arg0: i32, %arg1: i32, %arg2: memref<2x8x32xf32, #tpu.memory_space<vmem>>, %arg3: memref<2x32xf32, #tpu.memory_space<vmem>>, %arg4: memref<2x32xf32, #tpu.memory_space<vmem>>, %arg5: memref<2x1xf32, #tpu.memory_space<vmem>>) attributes {dimension_semantics = [#tpu.dimension_semantics<parallel>, #tpu.dimension_semantics<arbitrary>], iteration_bounds = array<i64: 1, 1>, scalar_prefetch = 0 : i64, scratch_operands = 1 : i64, tpu.core_type = #tpu.core_type<tc>, window_params = [{transform_indices = @transform_0, window_bounds = array<i64: 2, 8, 32>}, {transform_indices = @transform_1, window_bounds = array<i64: 2, 32>}, {transform_indices = @transform_2, window_bounds = array<i64: 2, 32>}]} {
    %c0_i32 = arith.constant 0 : i32
    %0 = arith.cmpi eq, %arg1, %c0_i32 : i32
    %1 = arith.extui %0 : i1 to i32
    %c0_i32_0 = arith.constant 0 : i32
    %2 = arith.cmpi ne, %1, %c0_i32_0 : i32
    scf.if %2 {
      %cst_16 = arith.constant 0.000000e+00 : f32
      %24 = vector.broadcast %cst_16 : f32 to vector<2x32xf32>
      %c0_17 = arith.constant 0 : index
      %c0_18 = arith.constant 0 : index
      %25 = vector.load %arg3[%c0_17, %c0_18] : memref<2x32xf32, #tpu.memory_space<vmem>>, vector<2x32xf32>
      tpu.vector_store %arg3[%c0_17, %c0_18], %24 {strides = array<i32>} : memref<2x32xf32, #tpu.memory_space<vmem>>, vector<2x32xf32>,
      %cst_19 = arith.constant 0.000000e+00 : f32
      %26 = vector.broadcast %cst_19 : f32 to vector<2x32xf32>
      %c0_20 = arith.constant 0 : index
      %c0_21 = arith.constant 0 : index
      %27 = vector.load %arg4[%c0_20, %c0_21] : memref<2x32xf32, #tpu.memory_space<vmem>>, vector<2x32xf32>
      tpu.vector_store %arg4[%c0_20, %c0_21], %26 {strides = array<i32>} : memref<2x32xf32, #tpu.memory_space<vmem>>, vector<2x32xf32>,
      %cst_22 = arith.constant 0xFF800000 : f32
      %28 = vector.broadcast %cst_22 : f32 to vector<2x1xf32>
      %c0_23 = arith.constant 0 : index
      %c0_24 = arith.constant 0 : index
      %29 = vector.load %arg5[%c0_23, %c0_24] : memref<2x1xf32, #tpu.memory_space<vmem>>, vector<2x1xf32>
      tpu.vector_store %arg5[%c0_23, %c0_24], %28 {strides = array<i32>} : memref<2x1xf32, #tpu.memory_space<vmem>>, vector<2x1xf32>,
    } else {
    }
    %c0 = arith.constant 0 : index
    %c0_1 = arith.constant 0 : index
    %c0_2 = arith.constant 0 : index
    %3 = vector.load %arg2[%c0, %c0_1, %c0_2] : memref<2x8x32xf32, #tpu.memory_space<vmem>>, vector<2x8x32xf32>
    %c0_3 = arith.constant 0 : index
    %c0_4 = arith.constant 0 : index
    %4 = vector.load %arg3[%c0_3, %c0_4] : memref<2x32xf32, #tpu.memory_space<vmem>>, vector<2x32xf32>
    %cst = arith.constant dense<0.000000e+00> : vector<2x32xf32>
    %5 = vector.multi_reduction <add>, %3, %cst [1] : vector<2x8x32xf32> to vector<2x32xf32>
    %6 = arith.addf %4, %5 : vector<2x32xf32>
    %c0_5 = arith.constant 0 : index
    %c0_6 = arith.constant 0 : index
    %7 = vector.load %arg3[%c0_5, %c0_6] : memref<2x32xf32, #tpu.memory_space<vmem>>, vector<2x32xf32>
    tpu.vector_store %arg3[%c0_5, %c0_6], %6 {strides = array<i32>} : memref<2x32xf32, #tpu.memory_space<vmem>>, vector<2x32xf32>,
    %8 = arith.mulf %3, %3 : vector<2x8x32xf32>
    %cst_7 = arith.constant dense<0.000000e+00> : vector<2x8xf32>
    %9 = vector.multi_reduction <add>, %8, %cst_7 [2] : vector<2x8x32xf32> to vector<2x8xf32>
    %cst_8 = arith.constant dense<0xFF800000> : vector<2xf32>
    %10 = vector.multi_reduction <maximumf>, %9, %cst_8 [1] : vector<2x8xf32> to vector<2xf32>
    %11 = vector.shape_cast %10 : vector<2xf32> to vector<2x1xf32>
    %c0_9 = arith.constant 0 : index
    %c0_10 = arith.constant 0 : index
    %12 = vector.load %arg5[%c0_9, %c0_10] : memref<2x1xf32, #tpu.memory_space<vmem>>, vector<2x1xf32>
    %13 = arith.cmpf ogt, %11, %12 : vector<2x1xf32>
    %cst_11 = arith.constant 1.000000e+00 : f32
    %cst_12 = arith.constant 0.000000e+00 : f32
    %14 = vector.broadcast %cst_11 : f32 to vector<2x1xf32>
    %15 = vector.broadcast %cst_12 : f32 to vector<2x1xf32>
    %16 = arith.select %13, %14, %15 : vector<2x1xi1>, vector<2x1xf32>
    %17 = vector.shape_cast %16 : vector<2x1xf32> to vector<1x2x1xf32>
    %cst_13 = arith.constant dense<0xFF800000> : vector<1xf32>
    %18 = vector.multi_reduction <maximumf>, %17, %cst_13 [1, 2] : vector<1x2x1xf32> to vector<1xf32>
    %19 = vector.shape_cast %18 : vector<1xf32> to vector<1x1x1xf32>
    %20 = vector.extract %19[0, 0, 0] : f32 from vector<1x1x1xf32>
    %cst_14 = arith.constant 0.000000e+00 : f32
    %21 = arith.cmpf ogt, %20, %cst_14 : f32
    %22 = arith.extui %21 : i1 to i32
    %c0_i32_15 = arith.constant 0 : i32
    %23 = arith.cmpi ne, %22, %c0_i32_15 : i32
    scf.if %23 {
      %24 = tpu.iota {dimensions = array<i32: 1>} : vector<2x8xi32>
      %25 = vector.broadcast %11 : vector<2x1xf32> to vector<2x8xf32>
      %26 = arith.cmpf oge, %9, %25 : vector<2x8xf32>
      %c8_i32 = arith.constant 8 : i32
      %27 = vector.broadcast %c8_i32 : i32 to vector<2x8xi32>
      %28 = arith.select %26, %24, %27 : vector<2x8xi1>, vector<2x8xi32>
      %cst_16 = arith.constant dense<2147483647> : vector<2xi32>
      %29 = vector.multi_reduction <minsi>, %28, %cst_16 [1] : vector<2x8xi32> to vector<2xi32>
      %30 = vector.shape_cast %29 : vector<2xi32> to vector<2x1xi32>
      %31 = vector.broadcast %30 : vector<2x1xi32> to vector<2x8xi32>
      %32 = arith.cmpi eq, %24, %31 : vector<2x8xi32>
      %33 = arith.extui %32 : vector<2x8xi1> to vector<2x8xi32>
      %34 = arith.sitofp %33 : vector<2x8xi32> to vector<2x8xf32>
      %35 = vector.shape_cast %34 : vector<2x8xf32> to vector<2x8x1xf32>
      %36 = vector.broadcast %35 : vector<2x8x1xf32> to vector<2x8x32xf32>
      %37 = arith.mulf %36, %3 : vector<2x8x32xf32>
      %cst_17 = arith.constant dense<0.000000e+00> : vector<2x32xf32>
      %38 = vector.multi_reduction <add>, %37, %cst_17 [1] : vector<2x8x32xf32> to vector<2x32xf32>
      %c0_18 = arith.constant 0 : index
      %c0_19 = arith.constant 0 : index
      %39 = vector.load %arg5[%c0_18, %c0_19] : memref<2x1xf32, #tpu.memory_space<vmem>>, vector<2x1xf32>
      %40 = arith.cmpf ogt, %11, %39 : vector<2x1xf32>
      %c0_20 = arith.constant 0 : index
      %c0_21 = arith.constant 0 : index
      %41 = vector.load %arg5[%c0_20, %c0_21] : memref<2x1xf32, #tpu.memory_space<vmem>>, vector<2x1xf32>
      %42 = arith.select %40, %11, %41 : vector<2x1xi1>, vector<2x1xf32>
      %c0_22 = arith.constant 0 : index
      %c0_23 = arith.constant 0 : index
      %43 = vector.load %arg5[%c0_22, %c0_23] : memref<2x1xf32, #tpu.memory_space<vmem>>, vector<2x1xf32>
      tpu.vector_store %arg5[%c0_22, %c0_23], %42 {strides = array<i32>} : memref<2x1xf32, #tpu.memory_space<vmem>>, vector<2x1xf32>,
      %c0_24 = arith.constant 0 : index
      %c0_25 = arith.constant 0 : index
      %44 = vector.load %arg4[%c0_24, %c0_25] : memref<2x32xf32, #tpu.memory_space<vmem>>, vector<2x32xf32>
      %45 = vector.shape_cast %40 : vector<2x1xi1> to vector<2x1xi1>
      %46 = vector.broadcast %45 : vector<2x1xi1> to vector<2x32xi1>
      %47 = arith.select %46, %38, %44 : vector<2x32xi1>, vector<2x32xf32>
      %c0_26 = arith.constant 0 : index
      %c0_27 = arith.constant 0 : index
      %48 = vector.load %arg4[%c0_26, %c0_27] : memref<2x32xf32, #tpu.memory_space<vmem>>, vector<2x32xf32>
      tpu.vector_store %arg4[%c0_26, %c0_27], %47 {strides = array<i32>} : memref<2x32xf32, #tpu.memory_space<vmem>>, vector<2x32xf32>,
    } else {
    }
    return
  }
  func.func @transform_0(%arg0: i32, %arg1: i32) -> (i32, i32, i32) {
    %c0_i32 = arith.constant 0 : i32
    %c0_i32_0 = arith.constant 0 : i32
    return %arg0, %arg1, %c0_i32 : i32, i32, i32
  }
  func.func @transform_1(%arg0: i32, %arg1: i32) -> (i32, i32) {
    %c0_i32 = arith.constant 0 : i32
    %c0_i32_0 = arith.constant 0 : i32
    return %arg0, %c0_i32 : i32, i32
  }
  func.func @transform_2(%arg0: i32, %arg1: i32) -> (i32, i32) {
    %c0_i32 = arith.constant 0 : i32
    %c0_i32_0 = arith.constant 0 : i32
    return %arg0, %c0_i32 : i32, i32
  }
}

</mosaic_0001>

<bundles_post_ra>
// kernel: tpu_custom_call.1
= control target key start
LH: loop header
LB: loop body
LE: loop exit
PB: predicated region body
PF: predicated region fallthrough
CT: control target
= control target key end

     0   :  { %8 = vsyncpa [#allocation4], 0  ;;  %s425_s0 = inlined_call_operand.hbm [shape: f32[2,8,32], index: 0, kind: input, shape index: {}]   ;;  %s426_s1 = inlined_call_operand.hbm [shape: f32[2,32], index: 1, kind: output, shape index: {0}]   ;;  %s427_s2 = inlined_call_operand.hbm [shape: f32[2,32], index: 2, kind: output, shape index: {1}]  }
   0x1   :  { %9 = vsyncpa [#allocation5], 0 }
   0x2   :  { %10 = vsyncpa [#allocation8], 0  ;;  %s317_s9 = smov [#allocation3]   ;;  %s245_s13 = scalar_lea.hbm %s425_s0, 256 }
   0x3   :  { %s16_s10 = sshll.u32 %s317_s9, 4  ;;  %p246_p0 = scmp.ne.s32.totalorder %s425_s0, %s245_s13  ;;  %s17_s10 = int_to_ptr.vmem [resolvable:$true] %s16_s10 }
   0x4   :  { %p249_p1 = scmp.lt.u32.totalorder %s245_s13, %s425_s0 }
   0x6   :  { %p251_p2 = pnand %p249_p1, %p246_p0 }
   0x8   :  { %254 = shalt.err (!%p251_p2)
}
   0x9   :  { %s255_s18 = scalar_lea.vmem %s17_s10, 256  ;;  %p260_p4 = scmp.lt.s32.totalorder %s17_s10, %s17_s10 }
   0xa   :  { %p256_p3 = scmp.ne.s32.totalorder %s17_s10, %s255_s18  ;;  %p261_p5 = scmp.lt.s32.totalorder %s255_s18, %s255_s18 }
   0xc   :  { %p262_p6 = por %p261_p5, %p260_p4 }
   0xe   :  { %p263_p7 = pnand %p262_p6, %p256_p3 }
  0x10   :  { %266 = shalt.err (!%p263_p7)
}
  0x11   :  { %s318_s19 = smov 128   ;;  %s319_s20 = smov 8  }
  0x12   :  { %22 = dma.hbm_to_vmem [thread:$0]  %s425_s0, 256, %s17_s10, [#allocation4], %s318_s19, %s318_s19, %s319_s20  }
  0x13   :  { %311 = dma.done.wait [#allocation4], 256  }
  0x14   :  { %312 = vsyncadd [#allocation4], 4294967040  ;;  %v353_v0 = vld [vmem:[#allocation3] sm:$0xff]  ;;  %vm38_vm0 = vcmask 261120   ;;  %v355_v1 = vld [vmem:[#allocation3 + $0x8] sm:$0xff]  ;;  %vm55_vm1 = vcmask 1041409   ;;  %v71_v22 = vlaneseq }
  0x15   :  { %v61_v2 = vmul.f32 %v353_v0, %v353_v0  ;;  %v39_v3 = vsel %vm38_vm0, %v353_v0, 0.0  ;;  %v46_v4 = vsel %vm38_vm0, %v355_v1, 0.0  ;;  %v62_v5 = vmul.f32 %v355_v1, %v355_v1 }
  0x16   :  { %v40_v6 = vrot.slane %v39_v3, 4  ;;  %v47_v7 = vrot.slane %v46_v4, 4  ;;  %vm33_vm2 = vcmask 1024   ;;  %v320_v21 = vmov -inf  }
  0x17   :  { %v63_v8 = vsel %vm38_vm0, %v61_v2, 0.0  ;;  %v66_v9 = vsel %vm38_vm0, %v62_v5, 0.0  ;;  %34 = vst.msk [vmem:[#allocation2] sm:$0x3] %vm33_vm2, %v320_v21  ;;  %v369_v23 = vand.u32 127, %v71_v22  ;;  %v371_v24 = vshrl.u32 %v71_v22, 7 }
  0x18   :  { %64 = vadd.xlane.f32.xlu0 %v63_v8  ;;  %v41_v10 = vadd.f32 %v40_v6, %v39_v3  ;;  %v48_v11 = vadd.f32 %v47_v7, %v46_v4  ;;  %vm83_vm3 = vcmask 58368   ;;  %vm30_vm4 = vcmask 254976  }
  0x19   :  { %v75_v26 = vsub.s32 %v369_v23, %v371_v24  ;;  %v321_v32 = vmov 0.0  }
  0x1a   :  { %v42_v12 = vrot.slane %v41_v10, 2  ;;  %v49_v13 = vrot.slane %v48_v11, 2  ;;  %31 = vst.msk [vmem:[#allocation6] sm:$0x3] %vm30_vm4, %v321_v32  ;;  %32 = vst.msk [vmem:[#allocation7] sm:$0x3] %vm30_vm4, %v321_v32 }
  0x1c   :  { %67 = vadd.xlane.f32.xlu0 %v66_v9  ;;  %v43_v14 = vadd.f32 %v42_v12, %v41_v10  ;;  %v50_v15 = vadd.f32 %v49_v13, %v48_v11 }
  0x1e   :  { %v44_v16 = vrot.slane %v43_v14, 1  ;;  %v51_v17 = vrot.slane %v50_v15, 1  ;;  %v87_v35 = vld [vmem:[#allocation2] sm:$0x3] }
  0x20   :  { %v45_v18 = vadd.f32 %v44_v16, %v43_v14  ;;  %v52_v19 = vadd.f32 %v51_v17, %v50_v15 }
  0x21   :  { %v37_v33 = vld [vmem:[#allocation6] sm:$0x3] }
  0x22   :  { %v56_v20 = vsel %vm55_vm1, %v52_v19, %v45_v18 }
  0x23   :  { %v58_v34 = vadd.f32 %v56_v20, %v37_v33 }
  0x25   :  { %60 = vst.msk [vmem:[#allocation6] sm:$0x3] %vm30_vm4, %v58_v34 }
  0xa5   :  { %v65_v25 = vpop.xlane.xlu0 %64 }
  0xa6   :  { %v76_v28 = vrot.slane %v65_v25, %v75_v26 }
  0xa9   :  { %v68_v27 = vpop.xlane.xlu0 %67 }
  0xaa   :  { %v80_v29 = vrot.slane %v68_v27, %v75_v26 }
  0xac   :  { %v81_v30 = vsel %vm55_vm1, %v80_v29, %v76_v28 }
  0xad   :  { %v84_v31 = vsel %vm83_vm3, %v81_v30, -inf }
  0xae   :  { %85 = vmax.xlane.f32.xlu1 %v84_v31 }
 0x13b   :  { %v380_v36 = vpop.xlane.xlu1 %85 }
 0x13c   :  { %vm88_vm5 = vcmp.gt.f32.partialorder %v380_v36, %v87_v35 }
 0x13d   :  { %v89_v37 = vsel %vm88_vm5, 1.0, %v321_v32 }
 0x13e   :  { %v91_v38 = vsel %vm33_vm2, %v89_v37, -inf }
 0x13f   :  { %92 = vmax.xlane.f32.xlu1 %v91_v38 }
 0x1cc   :  { %v93_v39 = vpop.xlane.xlu1 %92 }
 0x1cd   :  { %v94_v40 = vrot.slane %v93_v39, 4 }
 0x1cf   :  { %v95_v41 = vmax.f32 %v93_v39, %v94_v40 }
 0x1d1   :  { %v96_v42 = vrot.slane %v95_v41, 2 }
 0x1d3   :  { %v97_v43 = vmax.f32 %v95_v41, %v96_v42 }
 0x1d5   :  { %v98_v44 = vrot.slane %v97_v43, 1 }
 0x1d7   :  { %v99_v45 = vmax.f32 %v97_v43, %v98_v44 }
 0x1d9   :  { %232 = vpush %v99_v45 }
 0x20a   :  { %s233_s0 = spop %232 }
 0x20b   :  { %p101_p8 = scmp.gt.f32.partialorder %s233_s0, 0.0 }
 0x20c   :  { %119 = vbcast.lane.b32.xlu0 (%p101_p8), %v369_v23, 256  ;;  %v322_v46 = vmov (%p101_p8), 0   ;;  %v112_v47 = vsub.s32 (%p101_p8), 1, %v371_v24  ;;  %v108_v48 = vsub.s32 (%p101_p8), 0, %v371_v24  ;;  %v186_v4 = vld [vmem:[#allocation2] sm:$0x3] (%p101_p8) }
 0x20d   :  { %104 = sbr.rel (!%p101_p8) target bundleno = 1205 (0x4b5), region = 17  ;;  %244 = vset.pattern.permute.xlu1 (%p101_p8), %v322_v46  ;;  %243 = vset.pattern.permute.xlu0 (%p101_p8), %v322_v46  ;;  %vm187_vm9 = vcmp.gt.f32.partialorder (%p101_p8), %v380_v36, %v186_v4  ;;  %v323_v11 = vmov (%p101_p8), 0.0   ;;  %v190_v34 = vld [vmem:[#allocation7] sm:$0x3] (%p101_p8) }
 0x20e   :  { %v113_v49 = vrot.slane (%p101_p8), %v380_v36, %v112_v47  ;;  %v109_v50 = vrot.slane (%p101_p8), %v380_v36, %v108_v48  ;;  %v188_v5 = vsel (%p101_p8), %vm187_vm9, %v380_v36, %v186_v4  ;;  %v191_v15 = vsel (%p101_p8), %vm187_vm9, 1, %v322_v46 }
 0x20f   :  { %189 = vst.msk [vmem:[#allocation2] sm:$0x3] (%p101_p8), %vm33_vm2, %v188_v5 }
 0x210   :  { %vm117_vm6 = vcmp.ge.f32.partialorder (%p101_p8), %v68_v27, %v113_v49  ;;  %vm116_vm7 = vcmp.ge.f32.partialorder (%p101_p8), %v65_v25, %v109_v50 }
 0x27e   :  { %v120_v51 = vpop.permute.xlu0 %119 }
 0x27f   :  { %v122_v52 = vsel %vm117_vm6, %v120_v51, 8  ;;  %v121_v53 = vsel %vm116_vm7, %v120_v51, 8 }
 0x280   :  { %127 = vperm.xlu1 %244, %v122_v52   ;;  %124 = vperm.xlu0 %243, %v121_v53  }
 0x2ff   :  { %v128_v54 = vpop.permute.xlu1 %127  ;;  %v125_v55 = vpop.permute.xlu0 %124 }
 0x300   :  { %v136_v56 = vrot.slane %v128_v54, %v75_v26  ;;  %v132_v57 = vrot.slane %v125_v55, %v75_v26 }
 0x302   :  { %v137_v58 = vsel %vm55_vm1, %v136_v56, %v132_v57 }
 0x303   :  { %v138_v59 = vsel %vm83_vm3, %v137_v58, 2147483647 }
 0x304   :  { %v140_v60 = vshra.s32 %v138_v59, 16  ;;  %v139_v62 = vand.u32 65535, %v138_v59 }
 0x306   :  { %v142_v61 = vcvt.s32.f32 %v140_v60  ;;  %v141_v2 = vcvt.s32.f32 %v139_v62 }
 0x308   :  { %143 = vmin.xlane.f32.xlu1 %v142_v61 }
 0x395   :  { %v144_v63 = vpop.xlane.xlu1 %143 }
 0x396   :  { %vm145_vm8 = vcmp.eq.f32.partialorder %v142_v61, %v144_v63  ;;  %v150_v6 = vcvt.f32.s32 %v144_v63 }
 0x397   :  { %v146_v3 = vsel %vm145_vm8, %v141_v2, inf }
 0x398   :  { %147 = vmin.xlane.f32.xlu0 %v146_v3  ;;  %v151_v8 = vshll.u32 %v150_v6, 16 }
 0x425   :  { %v148_v7 = vpop.xlane.xlu0 %147 }
 0x426   :  { %v149_v9 = vcvt.f32.s32 %v148_v7 }
 0x428   :  { %v152_v10 = vadd.s32 %v151_v8, %v149_v9 }
 0x42a   :  { %vm153_vm10 = vcmp.eq.s32.totalorder %v369_v23, %v152_v10 }
 0x42b   :  { %v231_v12 = vsel %vm153_vm10, 1.0, %v323_v11 }
 0x42c   :  { %v166_v13 = vrot.slane %v231_v12, %v112_v47  ;;  %v159_v14 = vrot.slane %v231_v12, %v108_v48 }
 0x42e   :  { %168 = vbcast.lane.b32.xlu0 %v166_v13, 256  ;;  %161 = vbcast.lane.b32.xlu1 %v159_v14, 256 }
 0x432   :  { %193 = vperm.xlu1 %244, %v191_v15  }
 0x4a0   :  { %v169_v16 = vpop.permute.xlu0 %168  ;;  %v162_v17 = vpop.permute.xlu1 %161 }
 0x4a1   :  { %v171_v18 = vmul.f32 %v169_v16, %v355_v1  ;;  %v170_v19 = vmul.f32 %v162_v17, %v353_v0 }
 0x4a3   :  { %v179_v20 = vsel %vm38_vm0, %v171_v18, 0.0  ;;  %v172_v21 = vsel %vm38_vm0, %v170_v19, 0.0 }
 0x4a4   :  { %v180_v22 = vrot.slane %v179_v20, 4  ;;  %v173_v23 = vrot.slane %v172_v21, 4 }
 0x4a6   :  { %v181_v24 = vadd.f32 %v180_v22, %v179_v20  ;;  %v174_v25 = vadd.f32 %v173_v23, %v172_v21 }
 0x4a8   :  { %v182_v26 = vrot.slane %v181_v24, 2  ;;  %v175_v27 = vrot.slane %v174_v25, 2 }
 0x4aa   :  { %v183_v28 = vadd.f32 %v182_v26, %v181_v24  ;;  %v176_v29 = vadd.f32 %v175_v27, %v174_v25 }
 0x4ac   :  { %v184_v30 = vrot.slane %v183_v28, 1  ;;  %v177_v31 = vrot.slane %v176_v29, 1 }
 0x4ae   :  { %v185_v32 = vadd.f32 %v184_v30, %v183_v28  ;;  %v178_v33 = vadd.f32 %v177_v31, %v176_v29 }
 0x4b0   :  { %v198_v0 = vsel %vm55_vm1, %v185_v32, %v178_v33 }
 0x4b1   :  { %v194_v1 = vpop.permute.xlu1 %193 }
 0x4b2   :  { %vm195_vm11 = vcmp.eq.s32.totalorder %v194_v1, 1 }
 0x4b3   :  { %v200_v35 = vsel %vm195_vm11, %v198_v0, %v190_v34 }
 0x4b4   :  { %201 = vst.msk [vmem:[#allocation7] sm:$0x3] %vm30_vm4, %v200_v35 }
 0x4b5 PF:  { %s324_s23 = smov [#allocation6]   ;;  %s325_s25 = smov [#allocation7]  }
 0x4b6   :  { %s208_s24 = sshll.u32 %s324_s23, 4  ;;  %s218_s26 = sshll.u32 %s325_s25, 4  ;;  %s209_s24 = int_to_ptr.vmem [resolvable:$true] %s208_s24  ;;  %s219_s26 = int_to_ptr.vmem [resolvable:$true] %s218_s26 }
 0x4b7   :  { %s267_s27 = scalar_lea.vmem %s209_s24, 32  ;;  %p272_p10 = scmp.lt.s32.totalorder %s209_s24, %s209_s24 }
 0x4b8   :  { %p268_p9 = scmp.ne.s32.totalorder %s209_s24, %s267_s27  ;;  %p273_p11 = scmp.lt.s32.totalorder %s267_s27, %s267_s27 }
 0x4ba   :  { %p274_p12 = por %p273_p11, %p272_p10 }
 0x4bc   :  { %p275_p13 = pnand %p274_p12, %p268_p9 }
 0x4be   :  { %278 = shalt.err (!%p275_p13)
}
 0x4bf   :  { %s279_s30 = scalar_lea.hbm %s426_s1, 32 }
 0x4c0   :  { %p280_p0 = scmp.ne.s32.totalorder %s426_s1, %s279_s30  ;;  %p283_p1 = scmp.lt.u32.totalorder %s279_s30, %s426_s1 }
 0x4c2   :  { %p285_p2 = pnand %p283_p1, %p280_p0 }
 0x4c4   :  { %288 = shalt.err (!%p285_p2)
}
 0x4c5   :  { %211 = dma.vmem_to_hbm [thread:$0]  %s209_s24, 32, %s426_s1, [#allocation5]  }
 0x4c6   :  { %s289_s9 = scalar_lea.vmem %s219_s26, 32  ;;  %p294_p4 = scmp.lt.s32.totalorder %s219_s26, %s219_s26 }
 0x4c7   :  { %p290_p3 = scmp.ne.s32.totalorder %s219_s26, %s289_s9  ;;  %p295_p5 = scmp.lt.s32.totalorder %s289_s9, %s289_s9 }
 0x4c9   :  { %p296_p6 = por %p295_p5, %p294_p4 }
 0x4cb   :  { %p297_p7 = pnand %p296_p6, %p290_p3 }
 0x4cd   :  { %300 = shalt.err (!%p297_p7)
}
 0x4ce   :  { %s301_s12 = scalar_lea.hbm %s427_s2, 32 }
 0x4cf   :  { %p302_p8 = scmp.ne.s32.totalorder %s427_s2, %s301_s12  ;;  %p305_p9 = scmp.lt.u32.totalorder %s301_s12, %s427_s2 }
 0x4d1   :  { %p307_p10 = pnand %p305_p9, %p302_p8 }
 0x4d3   :  { %310 = shalt.err (!%p307_p10)
}
 0x4d4   :  { %221 = dma.vmem_to_hbm [thread:$0]  %s219_s26, 32, %s427_s2, [#allocation8]  }
 0x4d5   :  { %313 = dma.done.wait [#allocation5], 32  }
 0x4d6   :  { %314 = vsyncadd [#allocation5], 4294967264 }
 0x4d7   :  { %315 = dma.done.wait [#allocation8], 32  }
 0x4d8   :  { %316 = vsyncadd [#allocation8], 4294967264 }
 0x4d9   :  { %228 = vsyncpa [#allocation4], 1 }
 0x4da   :  { %229 = vsyncpa [#allocation5], 1 }
 0x4db   :  { %230 = vsyncpa [#allocation8], 1 }

</bundles_post_ra>
